<compile_context>
chip_gen: v7x
topology: tpu7x:2x2x1
jax: 0.10.0
libtpu: 0.0.40
codegen_flags: <defaults>
</compile_context>

<pallas_src>
import functools

import jax
import jax.numpy as jnp
from jax.experimental import pallas as pl
from jax.experimental.pallas import tpu as pltpu

_LANE = 128      # lane width (last-dim hardware tile)
_SUBLANE = 16    # sublane multiple used for the bf16 state tiles


def _round_up(x, m):
    return ((x + m - 1) // m) * m


def _value_net_kernel(x_ref, w1_ref, b1_ref, w2_ref, b2_ref, w3_ref, b3_ref,
                      out_ref, *, sub_b, n_sub):
    # x: (tile_b, S) bf16; w1: (S, H) bf16; w2: (H, H) bf16;
    # b1/b2/w3: (1, H) f32; b3: (1, 1) f32 in SMEM;
    # out: (1, n_sub, sub_b) f32 -- batch rows laid out along lanes.
    w1 = w1_ref[...]
    b1 = b1_ref[...]
    w2 = w2_ref[...]
    b2 = b2_ref[...]
    w3 = w3_ref[...]
    b3 = b3_ref[0, 0]

    def mlp_rows(x):
        # fc1 + ReLU  (bf16 MXU matmul, f32 accumulation)
        h1 = jnp.dot(x, w1, preferred_element_type=jnp.float32)
        h1 = jnp.maximum(h1 + b1, 0.0)
        # fc2 + ReLU
        h2 = jnp.dot(h1.astype(jnp.bfloat16), w2,
                     preferred_element_type=jnp.float32)
        h2 = jnp.maximum(h2 + b2, 0.0)
        # fc3: output width is 1 -> VPU multiply + XLU lane reduce.  No
        # keepdims so the per-row results come out lane-major and the store
        # below is a full-width (unmasked) vector store.
        return jnp.sum(h2 * w3, axis=-1) + b3          # (rows,)

    if n_sub == 1:
        out_ref[0, 0, :] = mlp_rows(x_ref[...]).astype(out_ref.dtype)
    else:
        # 128-row sub-blocks bound the live ranges of h1/h2 (avoids vreg
        # spills on v5e when the batch tile is large).
        def body(j, carry):
            r0 = pl.multiple_of(j * sub_b, sub_b)
            rows = mlp_rows(x_ref[pl.ds(r0, sub_b), :])
            out_ref[0, j, :] = rows.astype(out_ref.dtype)
            return carry

        jax.lax.fori_loop(0, n_sub, body, 0, unroll=True)


def value_net_forward(state, padded_params, *, max_tile_b=512):
    """Fused ValueNet forward.  state: (B, state_dim) f32 -> (B, 1) f32."""
    w1, b1, w2, b2, w3, b3 = padded_params
    B, S = state.shape
    H_pad = w1.shape[1]

    # ---- batch tiling ----------------------------------------------------
    B16 = _round_up(max(B, 1), _SUBLANE)
    if B16 <= max_tile_b:
        n_steps = 1
        tile_b = B16 if B16 <= _LANE else _round_up(B16, _LANE)
    else:
        n_steps = -(-B16 // max_tile_b)
        if n_steps % 2:
            n_steps += 1                 # even step count -> both v7x TCs busy
        tile_b = _round_up(-(-B16 // n_steps), _LANE)
    B_pad = n_steps * tile_b
    sub_b = _LANE if tile_b >= _LANE else tile_b
    n_sub = tile_b // sub_b

    # ---- input: bf16, batch-padded only (no feature-dim lane padding) -----
    x = state.astype(jnp.bfloat16)
    if B_pad != B:
        x = jnp.pad(x, ((0, B_pad - B), (0, 0)))

    resident = lambda i: (0, 0)    # constant block index -> stays VMEM-resident

    # VMEM actually needed (double-buffered tiles + weights) plus headroom,
    # capped well below v7x's 64 MiB physical VMEM.
    footprint = (2 * tile_b * S * 2                      # state tile (bf16) x2
                 + 2 * n_sub * sub_b * 4                 # output tile (f32) x2
                 + 2 * (S * H_pad + H_pad * H_pad) * 2   # w1, w2 (bf16) x2
                 + 2 * 3 * H_pad * 4)                    # b1, b2, w3 (f32) x2
    vmem_limit = int(min(32 << 20, max(8 << 20, 2 * footprint)))

    out = pl.pallas_call(
        functools.partial(_value_net_kernel, sub_b=sub_b, n_sub=n_sub),
        out_shape=jax.ShapeDtypeStruct((n_steps, n_sub, sub_b), jnp.float32),
        grid=(n_steps,),
        in_specs=[
            pl.BlockSpec((tile_b, S), lambda i: (i, 0)),        # state tile
            pl.BlockSpec((S, H_pad), resident),                 # w1 (bf16)
            pl.BlockSpec((1, H_pad), resident),                 # b1
            pl.BlockSpec((H_pad, H_pad), resident),             # w2 (bf16)
            pl.BlockSpec((1, H_pad), resident),                 # b2
            pl.BlockSpec((1, H_pad), resident),                 # w3 row (f32)
            pl.BlockSpec(memory_space=pltpu.MemorySpace.SMEM),  # b3 scalar
        ],
        out_specs=pl.BlockSpec((1, n_sub, sub_b), lambda i: (i, 0, 0)),
        compiler_params=pltpu.CompilerParams(
            dimension_semantics=("parallel",),
            vmem_limit_bytes=vmem_limit,
        ),
    )(x, w1, b1, w2, b2, w3, b3)

    # (n_steps, n_sub, sub_b) row-major flatten == original batch order.
    return out.reshape(-1)[:B].reshape(B, 1)


def init_value_net_params(key, state_dim, hidden_dim):
    """kaiming_uniform weights (as in weight_init_), zero biases.

    Weights are stored (in_features, out_features) so the kernel computes
    x @ W without a transpose.
    """
    k1, k2, k3 = jax.random.split(key, 3)

    def kaiming_uniform(k, fan_in, fan_out):
        bound = jnp.sqrt(6.0 / fan_in)   # torch kaiming_uniform_ default (a=0)
        return jax.random.uniform(
            k, (fan_in, fan_out), dtype=jnp.float32, minval=-bound, maxval=bound
        )

    w1 = kaiming_uniform(k1, state_dim, hidden_dim)
    b1 = jnp.zeros((1, hidden_dim), jnp.float32)
    w2 = kaiming_uniform(k2, hidden_dim, hidden_dim)
    b2 = jnp.zeros((1, hidden_dim), jnp.float32)
    w3 = kaiming_uniform(k3, hidden_dim, 1)
    b3 = jnp.zeros((1, 1), jnp.float32)
    return (w1, b1, w2, b2, w3, b3)


def pad_params_for_tpu(params):
    """Zero-pad the hidden dim to 128 lanes (zero padding preserves the forward
    pass exactly).  MXU weights (w1, w2) in bf16; biases and the fc3 row (VPU
    path) stay f32.  The state feature dim is intentionally NOT padded."""
    w1, b1, w2, b2, w3, b3 = params
    _, H = w1.shape
    H_pad = _round_up(H, _LANE)

    w1p = jnp.pad(w1, ((0, 0), (0, H_pad - H))).astype(jnp.bfloat16)
    b1p = jnp.pad(b1, ((0, 0), (0, H_pad - H)))
    w2p = jnp.pad(w2, ((0, H_pad - H), (0, H_pad - H))).astype(jnp.bfloat16)
    b2p = jnp.pad(b2, ((0, 0), (0, H_pad - H)))
    w3p = jnp.pad(w3.T, ((0, 0), (0, H_pad - H)))    # (1, H_pad) f32 row
    return (w1p, b1p, w2p, b2p, w3p, b3)


def value_net_reference(state, padded_params):
    """Pure-JAX reference matching the kernel's numerics (bf16 weights,
    bf16-rounded activations, f32 accumulation)."""
    w1, b1, w2, b2, w3, b3 = padded_params
    x = state.astype(jnp.bfloat16).astype(jnp.float32)
    h1 = jnp.maximum(x @ w1.astype(jnp.float32) + b1, 0.0)
    h1 = h1.astype(jnp.bfloat16).astype(jnp.float32)
    h2 = jnp.maximum(h1 @ w2.astype(jnp.float32) + b2, 0.0)
    return jnp.sum(h2 * w3, axis=-1, keepdims=True) + b3[0, 0]


if __name__ == "__main__":
    key = jax.random.PRNGKey(0)
    k_param, k_state, k_param2, k_state2 = jax.random.split(key, 4)

    # --- small, module-consistent shapes ------------------------------------
    batch, state_dim, hidden_dim = 2, 16, 32
    params = init_value_net_params(k_param, state_dim, hidden_dim)
    padded = pad_params_for_tpu(params)
    state = jax.random.normal(k_state, (batch, state_dim), dtype=jnp.float32)

    out = jax.block_until_ready(value_net_forward(state, padded))
    ref = value_net_reference(state, padded)
    assert out.shape == (batch, 1), out.shape
    assert jnp.allclose(out, ref, atol=2e-3, rtol=2e-3), (out, ref)

    # --- larger check: multi-step grid + 128-row sub-block loop + odd dims ---
    batch2, state_dim2, hidden_dim2 = 1200, 17, 200
    params2 = init_value_net_params(k_param2, state_dim2, hidden_dim2)
    padded2 = pad_params_for_tpu(params2)
    state2 = jax.random.normal(k_state2, (batch2, state_dim2), dtype=jnp.float32)

    out2 = jax.block_until_ready(value_net_forward(state2, padded2))
    ref2 = value_net_reference(state2, padded2)
    assert out2.shape == (batch2, 1), out2.shape
    assert jnp.allclose(out2, ref2, atol=5e-3, rtol=5e-3), float(
        jnp.max(jnp.abs(out2 - ref2)))

    print("KERNEL_OK")
</pallas_src>

<mosaic_0001>
module attributes {stable_mosaic.version = 11 : i64} {
  func.func @_value_net_kernel(%arg0: i32, %arg1: memref<16x16xbf16, #tpu.memory_space<vmem>>, %arg2: memref<16x128xbf16, #tpu.memory_space<vmem>>, %arg3: memref<1x128xf32, #tpu.memory_space<vmem>>, %arg4: memref<128x128xbf16, #tpu.memory_space<vmem>>, %arg5: memref<1x128xf32, #tpu.memory_space<vmem>>, %arg6: memref<1x128xf32, #tpu.memory_space<vmem>>, %arg7: memref<1x1xf32, #tpu.memory_space<smem>>, %arg8: memref<1x1x16xf32, #tpu.memory_space<vmem>>) attributes {dimension_semantics = [#tpu.dimension_semantics<parallel>], iteration_bounds = array<i64: 1>, scalar_prefetch = 0 : i64, scratch_operands = 0 : i64, tpu.core_type = #tpu.core_type<tc>, window_params = [{transform_indices = @transform_0, window_bounds = array<i64: 16, 16>}, {pipeline_mode = #tpu.pipeline_mode<synchronous>, transform_indices = @transform_1, window_bounds = array<i64: 16, 128>}, {pipeline_mode = #tpu.pipeline_mode<synchronous>, transform_indices = @transform_2, window_bounds = array<i64: 1, 128>}, {pipeline_mode = #tpu.pipeline_mode<synchronous>, transform_indices = @transform_3, window_bounds = array<i64: 128, 128>}, {pipeline_mode = #tpu.pipeline_mode<synchronous>, transform_indices = @transform_4, window_bounds = array<i64: 1, 128>}, {pipeline_mode = #tpu.pipeline_mode<synchronous>, transform_indices = @transform_5, window_bounds = array<i64: 1, 128>}, {transform_indices = @transform_6, window_bounds = array<i64: 1, 1>}, {transform_indices = @transform_7, window_bounds = array<i64: 1, 1, 16>}]} {
    %c0 = arith.constant 0 : index
    %c0_0 = arith.constant 0 : index
    %0 = vector.load %arg2[%c0, %c0_0] : memref<16x128xbf16, #tpu.memory_space<vmem>>, vector<16x128xbf16>
    %c0_1 = arith.constant 0 : index
    %c0_2 = arith.constant 0 : index
    %1 = vector.load %arg3[%c0_1, %c0_2] : memref<1x128xf32, #tpu.memory_space<vmem>>, vector<1x128xf32>
    %c0_3 = arith.constant 0 : index
    %c0_4 = arith.constant 0 : index
    %2 = vector.load %arg4[%c0_3, %c0_4] : memref<128x128xbf16, #tpu.memory_space<vmem>>, vector<128x128xbf16>
    %c0_5 = arith.constant 0 : index
    %c0_6 = arith.constant 0 : index
    %3 = vector.load %arg5[%c0_5, %c0_6] : memref<1x128xf32, #tpu.memory_space<vmem>>, vector<1x128xf32>
    %c0_7 = arith.constant 0 : index
    %c0_8 = arith.constant 0 : index
    %4 = vector.load %arg6[%c0_7, %c0_8] : memref<1x128xf32, #tpu.memory_space<vmem>>, vector<1x128xf32>
    %c0_9 = arith.constant 0 : index
    %c0_10 = arith.constant 0 : index
    %5 = memref.load %arg7[%c0_9, %c0_10] : memref<1x1xf32, #tpu.memory_space<smem>>
    %c0_11 = arith.constant 0 : index
    %c0_12 = arith.constant 0 : index
    %6 = vector.load %arg1[%c0_11, %c0_12] : memref<16x16xbf16, #tpu.memory_space<vmem>>, vector<16x16xbf16>
    %cst = arith.constant dense<0.000000e+00> : vector<16x128xf32>
    %7 = tpu.matmul %6, %0, %cst {dimension_numbers = #tpu.dot_dimension_numbers<[1], [0], [0], [1], [0, 0, 1, 1], [], []>} : vector<16x16xbf16>, vector<16x128xbf16>, vector<16x128xf32> -> vector<16x128xf32>
    %8 = vector.broadcast %1 : vector<1x128xf32> to vector<16x128xf32>
    %9 = arith.addf %7, %8 : vector<16x128xf32>
    %cst_13 = arith.constant 0.000000e+00 : f32
    %10 = vector.broadcast %cst_13 : f32 to vector<16x128xf32>
    %11 = arith.maximumf %9, %10 : vector<16x128xf32>
    %12 = arith.truncf %11 : vector<16x128xf32> to vector<16x128xbf16>
    %cst_14 = arith.constant dense<0.000000e+00> : vector<16x128xf32>
    %13 = tpu.matmul %12, %2, %cst_14 {dimension_numbers = #tpu.dot_dimension_numbers<[1], [0], [0], [1], [0, 0, 1, 1], [], []>} : vector<16x128xbf16>, vector<128x128xbf16>, vector<16x128xf32> -> vector<16x128xf32>
    %14 = vector.broadcast %3 : vector<1x128xf32> to vector<16x128xf32>
    %15 = arith.addf %13, %14 : vector<16x128xf32>
    %cst_15 = arith.constant 0.000000e+00 : f32
    %16 = vector.broadcast %cst_15 : f32 to vector<16x128xf32>
    %17 = arith.maximumf %15, %16 : vector<16x128xf32>
    %18 = vector.broadcast %4 : vector<1x128xf32> to vector<16x128xf32>
    %19 = arith.mulf %17, %18 : vector<16x128xf32>
    %cst_16 = arith.constant dense<0.000000e+00> : vector<16xf32>
    %20 = vector.multi_reduction <add>, %19, %cst_16 [1] : vector<16x128xf32> to vector<16xf32>
    %21 = vector.broadcast %5 : f32 to vector<16xf32>
    %22 = arith.addf %20, %21 : vector<16xf32>
    %c0_17 = arith.constant 0 : index
    %c0_18 = arith.constant 0 : index
    %c0_19 = arith.constant 0 : index
    %23 = vector.load %arg8[%c0_17, %c0_18, %c0_19] : memref<1x1x16xf32, #tpu.memory_space<vmem>>, vector<1x1x16xf32>
    %24 = vector.shape_cast %23 : vector<1x1x16xf32> to vector<16xf32>
    %25 = vector.shape_cast %22 : vector<16xf32> to vector<1x1x16xf32>
    tpu.vector_store %arg8[%c0_17, %c0_18, %c0_19], %25 {strides = array<i32>} : memref<1x1x16xf32, #tpu.memory_space<vmem>>, vector<1x1x16xf32>,
    return
  }
  func.func @transform_0(%arg0: i32) -> (i32, i32) {
    %c0_i32 = arith.constant 0 : i32
    %c0_i32_0 = arith.constant 0 : i32
    return %arg0, %c0_i32 : i32, i32
  }
  func.func @transform_1(%arg0: i32) -> (i32, i32) {
    %c0_i32 = arith.constant 0 : i32
    %c0_i32_0 = arith.constant 0 : i32
    %c0_i32_1 = arith.constant 0 : i32
    return %c0_i32, %c0_i32_0 : i32, i32
  }
  func.func @transform_2(%arg0: i32) -> (i32, i32) {
    %c0_i32 = arith.constant 0 : i32
    %c0_i32_0 = arith.constant 0 : i32
    %c0_i32_1 = arith.constant 0 : i32
    return %c0_i32, %c0_i32_0 : i32, i32
  }
  func.func @transform_3(%arg0: i32) -> (i32, i32) {
    %c0_i32 = arith.constant 0 : i32
    %c0_i32_0 = arith.constant 0 : i32
    %c0_i32_1 = arith.constant 0 : i32
    return %c0_i32, %c0_i32_0 : i32, i32
  }
  func.func @transform_4(%arg0: i32) -> (i32, i32) {
    %c0_i32 = arith.constant 0 : i32
    %c0_i32_0 = arith.constant 0 : i32
    %c0_i32_1 = arith.constant 0 : i32
    return %c0_i32, %c0_i32_0 : i32, i32
  }
  func.func @transform_5(%arg0: i32) -> (i32, i32) {
    %c0_i32 = arith.constant 0 : i32
    %c0_i32_0 = arith.constant 0 : i32
    %c0_i32_1 = arith.constant 0 : i32
    return %c0_i32, %c0_i32_0 : i32, i32
  }
  func.func @transform_6(%arg0: i32) -> (i32, i32) {
    %c0_i32 = arith.constant 0 : i32
    %c0_i32_0 = arith.constant 0 : i32
    %c0_i32_1 = arith.constant 0 : i32
    return %c0_i32, %c0_i32_0 : i32, i32
  }
  func.func @transform_7(%arg0: i32) -> (i32, i32, i32) {
    %c0_i32 = arith.constant 0 : i32
    %c0_i32_0 = arith.constant 0 : i32
    %c0_i32_1 = arith.constant 0 : i32
    return %arg0, %c0_i32, %c0_i32_0 : i32, i32, i32
  }
}

</mosaic_0001>

<bundles_post_ra>
// kernel: tpu_custom_call.1
= control target key start
LH: loop header
LB: loop body
LE: loop exit
PB: predicated region body
PF: predicated region fallthrough
CT: control target
= control target key end

     0   :  { %13 = vsyncpa [#allocation4], 0  ;;  %s592_s0 = inlined_call_operand.hbm [shape: bf16[16,16], index: 0, kind: input, shape index: {}]   ;;  %s593_s1 = inlined_call_operand.hbm [shape: bf16[16,128], index: 1, kind: input, shape index: {}]   ;;  %s594_s2 = inlined_call_operand.vmem [shape: f32[1,128], index: 2, kind: input, shape index: {}]   ;;  %s595_s3 = inlined_call_operand.hbm [shape: bf16[128,128], index: 3, kind: input, shape index: {}]   ;;  %s596_s4 = inlined_call_operand.vmem [shape: f32[1,128], index: 4, kind: input, shape index: {}]   ;;  %s597_s5 = inlined_call_operand.vmem [shape: f32[1,128], index: 5, kind: input, shape index: {}]   ;;  %s598_s6 = inlined_call_operand.<no memory space> [shape: f32[1,1], index: 6, kind: input, shape index: {}]   ;;  %s599_s7 = inlined_call_operand.hbm [shape: f32[1,1,16], index: 7, kind: output, shape index: {}]  }
   0x1   :  { %14 = vsyncpa [#allocation7], 0 }
   0x2   :  { %15 = vsyncpa [#allocation5], 0  ;;  %s468_s24 = smov [#allocation6]   ;;  %s469_s26 = smov [#allocation3]  }
   0x3   :  { %s33_s25 = sshll.u32 %s468_s24, 4  ;;  %s21_s27 = sshll.u32 %s469_s26, 4  ;;  %s34_s25 = int_to_ptr.vmem [resolvable:$true] %s33_s25  ;;  %s516_s27 = int_to_ptr.vmem [resolvable:$true] %s21_s27 }
   0x4   :  { %s374_s30 = scalar_lea.hbm %s593_s1, 128 }
   0x5   :  { %p375_p0 = scmp.ne.s32.totalorder %s593_s1, %s374_s30  ;;  %p378_p1 = scmp.lt.u32.totalorder %s374_s30, %s593_s1 }
   0x7   :  { %p380_p2 = pnand %p378_p1, %p375_p0 }
   0x9   :  { %383 = shalt.err (!%p380_p2)
}
   0xa   :  { %s384_s12 = scalar_lea.vmem %s34_s25, 128  ;;  %p389_p4 = scmp.lt.s32.totalorder %s34_s25, %s34_s25 }
   0xb   :  { %p385_p3 = scmp.ne.s32.totalorder %s34_s25, %s384_s12  ;;  %p390_p5 = scmp.lt.s32.totalorder %s384_s12, %s384_s12 }
   0xd   :  { %p391_p6 = por %p390_p5, %p389_p4 }
   0xf   :  { %p392_p7 = pnand %p391_p6, %p385_p3 }
  0x11   :  { %395 = shalt.err (!%p392_p7)
}
  0x12   :  { %s470_s13 = smov 64   ;;  %s471_s14 = smov 4  }
  0x13   :  { %39 = dma.hbm_to_vmem [thread:$0]  %s593_s1, 128, %s34_s25, [#allocation7], %s470_s13, %s470_s13, %s471_s14  }
  0x14   :  { %s396_s19 = scalar_lea.hbm %s592_s0, 128 }
  0x15   :  { %p397_p8 = scmp.ne.s32.totalorder %s592_s0, %s396_s19  ;;  %p400_p9 = scmp.lt.u32.totalorder %s396_s19, %s592_s0 }
  0x17   :  { %p402_p10 = pnand %p400_p9, %p397_p8 }
  0x19   :  { %405 = shalt.err (!%p402_p10)
}
  0x1a   :  { %s406_s24 = scalar_lea.vmem %s516_s27, 128  ;;  %p411_p12 = scmp.lt.s32.totalorder %s516_s27, %s516_s27 }
  0x1b   :  { %p407_p11 = scmp.ne.s32.totalorder %s516_s27, %s406_s24  ;;  %p412_p13 = scmp.lt.s32.totalorder %s406_s24, %s406_s24 }
  0x1d   :  { %p413_p0 = por %p412_p13, %p411_p12 }
  0x1f   :  { %p414_p1 = pnand %p413_p0, %p407_p11 }
  0x21   :  { %417 = shalt.err (!%p414_p1)
}
  0x22   :  { %27 = dma.hbm_to_vmem [thread:$0]  %s592_s0, 128, %s516_s27, [#allocation4], %s470_s13, %s470_s13, %s471_s14  }
  0x23   :  { %s472_s26 = smov [#allocation8]   ;;  %s418_s8 = scalar_lea.hbm %s595_s3, 1024 }
  0x24   :  { %s47_s28 = sshll.u32 %s472_s26, 4  ;;  %p419_p2 = scmp.ne.s32.totalorder %s595_s3, %s418_s8  ;;  %s48_s28 = int_to_ptr.vmem [resolvable:$true] %s47_s28 }
  0x25   :  { %p422_p3 = scmp.lt.u32.totalorder %s418_s8, %s595_s3 }
  0x27   :  { %p424_p4 = pnand %p422_p3, %p419_p2 }
  0x29   :  { %427 = shalt.err (!%p424_p4)
}
  0x2a   :  { %s428_s15 = scalar_lea.vmem %s48_s28, 1024  ;;  %p433_p6 = scmp.lt.s32.totalorder %s48_s28, %s48_s28 }
  0x2b   :  { %p429_p5 = scmp.ne.s32.totalorder %s48_s28, %s428_s15  ;;  %p434_p7 = scmp.lt.s32.totalorder %s428_s15, %s428_s15 }
  0x2d   :  { %p435_p8 = por %p434_p7, %p433_p6 }
  0x2f   :  { %p436_p9 = pnand %p435_p8, %p429_p5 }
  0x31   :  { %439 = shalt.err (!%p436_p9)
}
  0x32   :  { %53 = dma.hbm_to_vmem [thread:$0]  %s595_s3, 1024, %s48_s28, [#allocation7], %s470_s13, %s470_s13, %s471_s14  }
  0x33   :  { %462 = dma.done.wait [#allocation4], 128  }
  0x34   :  { %463 = vsyncadd [#allocation4], 4294967168 }
  0x35   :  { %464 = dma.done.wait [#allocation7], 1152  }
  0x36   :  { %465 = vsyncadd [#allocation7], 4294966144  ;;  %v473_v0 = vmov 0.0   ;;  %vm474_vm0 = vmmov 0   ;;  %v364_v1 = vld [vmem:[#allocation6] sm:$0xff]   ;;  %v365_v2 = vld [vmem:[#allocation3] sm:$0xff]   ;;  %v273_v33 = vlaneseq  ;;  %v268_v37 = vstv %s598_s6 }
  0x37   :  { %330 = vmatprep.subr.bf16.mxu0 %v473_v0  ;;  %332 = vmatprep.mubr.msk.bf16.mxu0 %vm474_vm0, %v473_v0  ;;  %vm111_vm1 = vcmask 130048   ;;  %v366_v3 = vld [vmem:[#allocation8] sm:$0xff]   ;;  %v367_v4 = vld [vmem:[#allocation8 + $0x8] sm:$0xff]   ;;  %v368_v5 = vld [vmem:[#allocation8 + $0x10] sm:$0xff]   ;;  %vm284_vm2 = vcmask 130112   ;;  %vm287_vm3 = vcmask 122880  }
  0x38   :  { %336 = vmatprep.subr.bf16.mxu1 %v473_v0  ;;  %352 = vmatprep.mubr.msk.bf16.mxu1 %vm474_vm0, %v473_v0  ;;  %v369_v6 = vld [vmem:[#allocation8 + $0x18] sm:$0xff]   ;;  %v370_v7 = vld [vmem:[#allocation8 + $0x20] sm:$0xff]   ;;  %v371_v8 = vld [vmem:[#allocation8 + $0x28] sm:$0xff]   ;;  %v274_v34 = vand.u32 127, %v273_v33  ;;  %v276_v35 = vshrl.u32 %v273_v33, 7 }
  0x39   :  { %331 = vmatpush3.bf16.msra.mxu0 %v364_v1  ;;  %337 = vmatpush3.bf16.msra.mxu1 %v366_v3  ;;  %v372_v9 = vld [vmem:[#allocation8 + $0x30] sm:$0xff]   ;;  %v373_v10 = vld [vmem:[#allocation8 + $0x38] sm:$0xff]  }
  0x3a   :  { %338 = vmatprep.subr.bf16.mxu1 %v473_v0  ;;  %v305_v11 = vld [vmem:[%s594_s2] ss:$0 sm:$0xff]  ;;  %v279_v36 = vadd.s32 4294967288, %v274_v34  ;;  %v277_v39 = vsub.s32 %v274_v34, %v276_v35 }
  0x3b   :  { %v309_v21 = vld [vmem:[%s596_s4] ss:$0 sm:$0xff] }
  0x3c   :  { %333 = vmatmul.mubr.msk.bf16.vlgmr.msra.gmra.mrb[0].mxu0 %vm111_vm1, %v365_v2  ;;  %v318_v26 = vld [vmem:[%s597_s5] ss:$0 sm:$0xff]  ;;  %v282_v41 = vsub.s32 %v279_v36, %v276_v35  ;;  %s475_s5 = smov [#allocation9]  }
  0x3d   :  { %339 = vmatpush3.bf16.msra.mxu1 %v367_v4  ;;  %s295_s19 = sshll.u32 %s475_s5, 4  ;;  %s296_s19 = int_to_ptr.vmem [resolvable:$true] %s295_s19 }
  0x3e   :  { %340 = vmatprep.subr.bf16.mxu1 %v473_v0  ;;  %s440_s20 = scalar_lea.vmem %s296_s19, 16  ;;  %s444_s21 = scalar_lea.vmem %s296_s19, 32 }
  0x3f   :  { %p441_p10 = scmp.ne.s32.totalorder %s296_s19, %s440_s20  ;;  %p445_p11 = scmp.lt.s32.totalorder %s296_s19, %s296_s19 }
  0x40   :  { %p446_p12 = scmp.lt.s32.totalorder %s444_s21, %s440_s20 }
  0x41   :  { %341 = vmatpush3.bf16.msra.mxu1 %v368_v5 }
  0x42   :  { %342 = vmatprep.subr.bf16.mxu1 %v473_v0  ;;  %p447_p13 = por %p446_p12, %p445_p11 }
  0x44   :  { %p448_p0 = pnand %p447_p13, %p441_p10 }
  0x45   :  { %343 = vmatpush3.bf16.msra.mxu1 %v369_v6 }
  0x46   :  { %344 = vmatprep.subr.bf16.mxu1 %v473_v0 }
  0x49   :  { %345 = vmatpush3.bf16.msra.mxu1 %v370_v7 }
  0x4a   :  { %346 = vmatprep.subr.bf16.mxu1 %v473_v0 }
  0x4d   :  { %347 = vmatpush3.bf16.msra.mxu1 %v371_v8 }
  0x4e   :  { %348 = vmatprep.subr.bf16.mxu1 %v473_v0 }
  0x51   :  { %349 = vmatpush3.bf16.msra.mxu1 %v372_v9 }
  0x52   :  { %350 = vmatprep.subr.bf16.mxu1 %v473_v0 }
  0x55   :  { %351 = vmatpush3.bf16.msra.mxu1 %v373_v10 }
 0x10f   :  { %v149_v12 = vpop.f32.mrb[0].mxu0 }
 0x110   :  { %v150_v13 = vadd.f32 %v305_v11, %v149_v12  ;;  %v334_v14 = vpop.f32.mrb[1].mxu0 }
 0x111   :  { %v152_v15 = vpop.f32.mrb[2].mxu0 }
 0x112   :  { %v153_v16 = vadd.f32 %v305_v11, %v152_v15  ;;  %v335_v17 = vpop.f32.mrb[3].mxu0  ;;  %v156_v18 = vmax.f32 %v150_v13, 0.0 }
 0x114   :  { %v157_v19 = vmax.f32 %v153_v16, 0.0 }
 0x116   :  { %v158_v20 = vpack.c.bf16 %v157_v19, %v156_v18 }
 0x118   :  { %353 = vmatmul.mubr.bf16.vlgmr.msra.gmra.mrb[0].mxu1 %v158_v20 }
 0x1eb   :  { %v247_v22 = vpop.f32.mrb[0].mxu1 }
 0x1ec   :  { %v248_v23 = vadd.f32 %v309_v21, %v247_v22  ;;  %v354_v24 = vpop.f32.mrb[1].mxu1 }
 0x1ed   :  { %v250_v25 = vpop.f32.mrb[2].mxu1 }
 0x1ee   :  { %v254_v27 = vmax.f32 %v248_v23, 0.0  ;;  %v251_v28 = vadd.f32 %v309_v21, %v250_v25  ;;  %v355_v29 = vpop.f32.mrb[3].mxu1 }
 0x1f0   :  { %v255_v30 = vmax.f32 %v251_v28, 0.0  ;;  %v262_v31 = vmul.f32 %v318_v26, %v254_v27 }
 0x1f2   :  { %264 = vadd.xlane.f32.xlu0 %v262_v31  ;;  %v263_v32 = vmul.f32 %v318_v26, %v255_v30 }
 0x1f6   :  { %266 = vadd.xlane.f32.xlu0 %v263_v32 }
 0x27f   :  { %v265_v38 = vpop.xlane.xlu0 %264 }
 0x280   :  { %v269_v40 = vadd.f32 %v268_v37, %v265_v38 }
 0x282   :  { %v278_v44 = vrot.slane %v269_v40, %v277_v39 }
 0x283   :  { %v267_v42 = vpop.xlane.xlu0 %266 }
 0x284   :  { %v270_v43 = vadd.f32 %v268_v37, %v267_v42 }
 0x286   :  { %v283_v45 = vrot.slane %v270_v43, %v282_v41 }
 0x288   :  { %v285_v46 = vsel %vm284_vm2, %v283_v45, %v278_v44 }
 0x289   :  { %288 = vst.msk [vmem:[#allocation9] sm:$0x1] %vm287_vm3, %v285_v46 }
 0x28a   :  { %451 = shalt.err (!%p448_p0)
}
 0x28b   :  { %s452_s23 = scalar_lea.hbm %s599_s7, 16 }
 0x28c   :  { %p453_p1 = scmp.ne.s32.totalorder %s599_s7, %s452_s23  ;;  %p456_p2 = scmp.lt.u32.totalorder %s452_s23, %s599_s7 }
 0x28e   :  { %p458_p3 = pnand %p456_p2, %p453_p1 }
 0x290   :  { %461 = shalt.err (!%p458_p3)
}
 0x291   :  { %298 = dma.vmem_to_hbm [thread:$0]  %s296_s19, 16, %s599_s7, [#allocation5]  }
 0x292   :  { %466 = dma.done.wait [#allocation5], 16  }
 0x293   :  { %467 = vsyncadd [#allocation5], 4294967280 }
 0x294   :  { %302 = vsyncpa [#allocation4], 1 }
 0x295   :  { %303 = vsyncpa [#allocation7], 1 }
 0x296   :  { %304 = vsyncpa [#allocation5], 1 }

</bundles_post_ra>
